<compile_context>
chip_gen: v6e
topology: v6e:2x2x1
jax: 0.10.0
libtpu: 0.0.40
codegen_flags: <defaults>
</compile_context>

<pallas_src>
import functools

import jax
import jax.numpy as jnp
from jax.experimental import pallas as pl
from jax.experimental.pallas import tpu as pltpu

EPS = 1e-5


def basic_block_kernel(x_ref, a_ref, su_ref, sd_ref, g_ref,
                       g1_ref, b1_ref, g3_ref, b3_ref, out_ref,
                       *, inv_count):
    """Fused conv/BN/relu/conv/BN/add/relu on lane-dense (N*H, W*C) activations."""
    X = x_ref[...]                       # (NH, WC) f32
    A0 = a_ref[0]                        # (WC, WC) conv matrix for kh = 0 (x[h-1])
    A1 = a_ref[1]                        # kh = 1 (x[h])
    A2 = a_ref[2]                        # kh = 2 (x[h+1])
    Su = su_ref[...]                     # (NH, NH): row r <- row r+1, 0 at h == H-1
    Sd = sd_ref[...]                     # (NH, NH): row r <- row r-1, 0 at h == 0
    G = g_ref[...]                       # (WC, WC): 1 where two lanes share a channel

    def conv3x3(z):
        # 3x3 same conv, stride 1, no bias.  h-shifts via Su/Sd matmuls; kw shift,
        # width zero-padding and the channel contraction are folded into A0/A1/A2.
        zd = jnp.dot(Sd, z, preferred_element_type=jnp.float32)   # holds x[h-1]
        zu = jnp.dot(Su, z, preferred_element_type=jnp.float32)   # holds x[h+1]
        acc = jnp.dot(zd, A0, preferred_element_type=jnp.float32)
        acc = acc + jnp.dot(z, A1, preferred_element_type=jnp.float32)
        acc = acc + jnp.dot(zu, A2, preferred_element_type=jnp.float32)
        return acc

    def batchnorm(z, gamma_wc, beta_wc):
        # Training-mode BN (batch stats, biased variance), fused one-pass form:
        # per-lane sum / sum-of-squares, channel-group reduce+broadcast via G,
        # then y = z * scale + shift.  (At this M = N*H*W the E[x^2] - E[x]^2
        # form is numerically fine in f32; var is clamped at 0 for safety.)
        s = jnp.sum(z, axis=0, keepdims=True)            # (1, WC)
        sq = jnp.sum(z * z, axis=0, keepdims=True)       # (1, WC)
        mean = jnp.dot(s, G, preferred_element_type=jnp.float32) * inv_count
        ex2 = jnp.dot(sq, G, preferred_element_type=jnp.float32) * inv_count
        var = jnp.maximum(ex2 - mean * mean, 0.0)
        scale = gamma_wc * jax.lax.rsqrt(var + EPS)
        shift = beta_wc - mean * scale
        return z * scale + shift

    # ---- out = relu(bn1(conv1(x))) ----
    h1 = jnp.maximum(batchnorm(conv3x3(X), g1_ref[...], b1_ref[...]), 0.0)
    # ---- out = bn3(conv1(out)) ----  (same conv weights)
    h2 = batchnorm(conv3x3(h1), g3_ref[...], b3_ref[...])
    # ---- out = relu(out + shortcut(x)) ----
    out_ref[...] = jnp.maximum(h2 + X, 0.0)


def basic_block_fix(x_nchw, w_oihw, g1, b1, g3, b3):
    """PyTorch-convention inputs: x NCHW, conv weight OIHW.  Returns NCHW output."""
    N, C, H, W = x_nchw.shape
    WC = W * C
    NH = N * H
    # Lane-dense activation layout: row = n*H + h, lane = w*C + c.
    assert WC % 128 == 0, "pick W*C a multiple of 128 for a lane-dense layout"

    x2 = jnp.transpose(x_nchw, (0, 2, 3, 1)).astype(jnp.float32).reshape(NH, WC)

    # Conv-as-matmul matrices A[kh] : (WC, WC), folding kw shift + width padding
    # + channel contraction:  A[kh][w'*C+ci, w*C+co] = wgt[kh, w'-w+1, ci, co].
    w_hwio = jnp.transpose(w_oihw, (2, 3, 1, 0)).astype(jnp.float32)  # (kh,kw,ci,co)
    a_mats = []
    for kh in range(3):
        a_k = jnp.zeros((WC, WC), jnp.float32)
        for dw in (-1, 0, 1):                                # dw = dest_w - src_w
            shift_w = jnp.eye(W, k=dw, dtype=jnp.float32)    # [w', w'+dw] = 1
            a_k = a_k + jnp.kron(shift_w, w_hwio[kh, 1 - dw])
        a_mats.append(a_k)
    a = jnp.stack(a_mats)                                    # (3, WC, WC)

    # Row (h) shift matrices with zeros at image h-borders (the zero padding).
    idx = jnp.arange(NH - 1)
    su = jnp.diag((idx % H != H - 1).astype(jnp.float32), k=1)      # row r <- r+1
    sd = jnp.diag(((idx + 1) % H != 0).astype(jnp.float32), k=-1)   # row r <- r-1

    # Channel-group reduce/broadcast matrix for the BN statistics.
    lane = jnp.arange(WC)
    g_mat = (lane[:, None] % C == lane[None, :] % C).astype(jnp.float32)

    # BN affine params tiled to the lane layout (value at lane w*C+c is param[c]).
    g1wc = jnp.tile(g1.astype(jnp.float32), W).reshape(1, WC)
    b1wc = jnp.tile(b1.astype(jnp.float32), W).reshape(1, WC)
    g3wc = jnp.tile(g3.astype(jnp.float32), W).reshape(1, WC)
    b3wc = jnp.tile(b3.astype(jnp.float32), W).reshape(1, WC)

    vmem = pl.BlockSpec(memory_space=pltpu.MemorySpace.VMEM)
    kernel = functools.partial(basic_block_kernel,
                               inv_count=1.0 / float(N * H * W))
    # TODO(synk): at real ResNet sizes (e.g. N=32, C=64, 56x56) add a grid over
    # batch/row tiles (two-phase BN reduction, dimension_semantics, explicit
    # vmem_limit_bytes); the demo shape fits whole-array VMEM residency (~0.5 MiB).
    out2 = pl.pallas_call(
        kernel,
        out_shape=jax.ShapeDtypeStruct((NH, WC), jnp.float32),
        in_specs=[vmem] * 9,
        out_specs=vmem,
    )(x2, a, su, sd, g_mat, g1wc, b1wc, g3wc, b3wc)

    return jnp.transpose(out2.reshape(N, H, W, C), (0, 3, 1, 2))


def reference(x_nchw, w_oihw, g1, b1, g3, b3):
    # Pure-JAX reference of the PyTorch forward (training-mode BN).
    def conv(x):
        return jax.lax.conv_general_dilated(
            x, w_oihw, window_strides=(1, 1), padding=((1, 1), (1, 1)),
            dimension_numbers=("NCHW", "OIHW", "NCHW"))

    def bn(x, g, b):
        mean = jnp.mean(x, axis=(0, 2, 3), keepdims=True)
        var = jnp.mean((x - mean) ** 2, axis=(0, 2, 3), keepdims=True)
        return ((x - mean) * jax.lax.rsqrt(var + EPS)
                * g.reshape(1, -1, 1, 1) + b.reshape(1, -1, 1, 1))

    out = jax.nn.relu(bn(conv(x_nchw), g1, b1))
    out = bn(conv(out), g3, b3)
    return jax.nn.relu(out + x_nchw)


if __name__ == "__main__":
    N, C, H, W = 2, 8, 16, 16          # in_planes == planes, stride == 1; W*C == 128
    key = jax.random.PRNGKey(0)
    k1, k2, k3, k4 = jax.random.split(key, 4)

    x = jax.random.normal(k1, (N, C, H, W), jnp.float32)
    w = 0.1 * jax.random.normal(k2, (C, C, 3, 3), jnp.float32)   # conv1, bias=False
    # BatchNorm affine params (PyTorch default is ones/zeros; perturbed so the
    # affine path is actually exercised).
    g1 = 1.0 + 0.1 * jax.random.normal(k3, (C,), jnp.float32)
    b1 = jnp.zeros((C,), jnp.float32)
    g3 = jnp.ones((C,), jnp.float32)
    b3 = 0.1 * jax.random.normal(k4, (C,), jnp.float32)

    out = basic_block_fix(x, w, g1, b1, g3, b3)
    out = jax.block_until_ready(out)

    ref = reference(x, w, g1, b1, g3, b3)
    err = float(jnp.max(jnp.abs(out - ref)))
    assert jnp.allclose(out, ref, atol=1e-3, rtol=1e-3), f"max abs err {err}"
    print("KERNEL_OK")
</pallas_src>

<mosaic_0001>
module attributes {stable_mosaic.version = 11 : i64} {
  func.func @basic_block_kernel(%arg0: memref<32x128xf32, #tpu.memory_space<vmem>>, %arg1: memref<3x128x128xf32, #tpu.memory_space<vmem>>, %arg2: memref<32x32xf32, #tpu.memory_space<vmem>>, %arg3: memref<32x32xf32, #tpu.memory_space<vmem>>, %arg4: memref<128x128xf32, #tpu.memory_space<vmem>>, %arg5: memref<1x128xf32, #tpu.memory_space<vmem>>, %arg6: memref<1x128xf32, #tpu.memory_space<vmem>>, %arg7: memref<1x128xf32, #tpu.memory_space<vmem>>, %arg8: memref<1x128xf32, #tpu.memory_space<vmem>>, %arg9: memref<32x128xf32, #tpu.memory_space<vmem>>) attributes {dimension_semantics = [], scalar_prefetch = 0 : i64, scratch_operands = 0 : i64, tpu.core_type = #tpu.core_type<tc>} {
    %c0 = arith.constant 0 : index
    %c0_0 = arith.constant 0 : index
    %0 = vector.load %arg0[%c0, %c0_0] : memref<32x128xf32, #tpu.memory_space<vmem>>, vector<32x128xf32>
    %c0_1 = arith.constant 0 : index
    %c0_2 = arith.constant 0 : index
    %c0_3 = arith.constant 0 : index
    %1 = vector.load %arg1[%c0_1, %c0_2, %c0_3] : memref<3x128x128xf32, #tpu.memory_space<vmem>>, vector<1x128x128xf32>
    %2 = vector.shape_cast %1 : vector<1x128x128xf32> to vector<128x128xf32>
    %c1 = arith.constant 1 : index
    %c0_4 = arith.constant 0 : index
    %c0_5 = arith.constant 0 : index
    %3 = vector.load %arg1[%c1, %c0_4, %c0_5] : memref<3x128x128xf32, #tpu.memory_space<vmem>>, vector<1x128x128xf32>
    %4 = vector.shape_cast %3 : vector<1x128x128xf32> to vector<128x128xf32>
    %c2 = arith.constant 2 : index
    %c0_6 = arith.constant 0 : index
    %c0_7 = arith.constant 0 : index
    %5 = vector.load %arg1[%c2, %c0_6, %c0_7] : memref<3x128x128xf32, #tpu.memory_space<vmem>>, vector<1x128x128xf32>
    %6 = vector.shape_cast %5 : vector<1x128x128xf32> to vector<128x128xf32>
    %c0_8 = arith.constant 0 : index
    %c0_9 = arith.constant 0 : index
    %7 = vector.load %arg2[%c0_8, %c0_9] : memref<32x32xf32, #tpu.memory_space<vmem>>, vector<32x32xf32>
    %c0_10 = arith.constant 0 : index
    %c0_11 = arith.constant 0 : index
    %8 = vector.load %arg3[%c0_10, %c0_11] : memref<32x32xf32, #tpu.memory_space<vmem>>, vector<32x32xf32>
    %c0_12 = arith.constant 0 : index
    %c0_13 = arith.constant 0 : index
    %9 = vector.load %arg4[%c0_12, %c0_13] : memref<128x128xf32, #tpu.memory_space<vmem>>, vector<128x128xf32>
    %cst = arith.constant dense<0.000000e+00> : vector<32x128xf32>
    %10 = tpu.matmul %8, %0, %cst {dimension_numbers = #tpu.dot_dimension_numbers<[1], [0], [0], [1], [0, 0, 1, 1], [], []>} : vector<32x32xf32>, vector<32x128xf32>, vector<32x128xf32> -> vector<32x128xf32>
    %cst_14 = arith.constant dense<0.000000e+00> : vector<32x128xf32>
    %11 = tpu.matmul %7, %0, %cst_14 {dimension_numbers = #tpu.dot_dimension_numbers<[1], [0], [0], [1], [0, 0, 1, 1], [], []>} : vector<32x32xf32>, vector<32x128xf32>, vector<32x128xf32> -> vector<32x128xf32>
    %cst_15 = arith.constant dense<0.000000e+00> : vector<32x128xf32>
    %12 = tpu.matmul %10, %2, %cst_15 {dimension_numbers = #tpu.dot_dimension_numbers<[1], [0], [0], [1], [0, 0, 1, 1], [], []>} : vector<32x128xf32>, vector<128x128xf32>, vector<32x128xf32> -> vector<32x128xf32>
    %cst_16 = arith.constant dense<0.000000e+00> : vector<32x128xf32>
    %13 = tpu.matmul %0, %4, %cst_16 {dimension_numbers = #tpu.dot_dimension_numbers<[1], [0], [0], [1], [0, 0, 1, 1], [], []>} : vector<32x128xf32>, vector<128x128xf32>, vector<32x128xf32> -> vector<32x128xf32>
    %14 = arith.addf %12, %13 : vector<32x128xf32>
    %cst_17 = arith.constant dense<0.000000e+00> : vector<32x128xf32>
    %15 = tpu.matmul %11, %6, %cst_17 {dimension_numbers = #tpu.dot_dimension_numbers<[1], [0], [0], [1], [0, 0, 1, 1], [], []>} : vector<32x128xf32>, vector<128x128xf32>, vector<32x128xf32> -> vector<32x128xf32>
    %16 = arith.addf %14, %15 : vector<32x128xf32>
    %c0_18 = arith.constant 0 : index
    %c0_19 = arith.constant 0 : index
    %17 = vector.load %arg5[%c0_18, %c0_19] : memref<1x128xf32, #tpu.memory_space<vmem>>, vector<1x128xf32>
    %c0_20 = arith.constant 0 : index
    %c0_21 = arith.constant 0 : index
    %18 = vector.load %arg6[%c0_20, %c0_21] : memref<1x128xf32, #tpu.memory_space<vmem>>, vector<1x128xf32>
    %cst_22 = arith.constant dense<0.000000e+00> : vector<128xf32>
    %19 = vector.multi_reduction <add>, %16, %cst_22 [0] : vector<32x128xf32> to vector<128xf32>
    %20 = vector.shape_cast %19 : vector<128xf32> to vector<1x128xf32>
    %21 = arith.mulf %16, %16 : vector<32x128xf32>
    %cst_23 = arith.constant dense<0.000000e+00> : vector<128xf32>
    %22 = vector.multi_reduction <add>, %21, %cst_23 [0] : vector<32x128xf32> to vector<128xf32>
    %23 = vector.shape_cast %22 : vector<128xf32> to vector<1x128xf32>
    %cst_24 = arith.constant dense<0.000000e+00> : vector<1x128xf32>
    %24 = tpu.matmul %20, %9, %cst_24 {dimension_numbers = #tpu.dot_dimension_numbers<[1], [0], [0], [1], [0, 0, 1, 1], [], []>} : vector<1x128xf32>, vector<128x128xf32>, vector<1x128xf32> -> vector<1x128xf32>
    %cst_25 = arith.constant 0.001953125 : f32
    %25 = vector.broadcast %cst_25 : f32 to vector<1x128xf32>
    %26 = arith.mulf %24, %25 : vector<1x128xf32>
    %cst_26 = arith.constant dense<0.000000e+00> : vector<1x128xf32>
    %27 = tpu.matmul %23, %9, %cst_26 {dimension_numbers = #tpu.dot_dimension_numbers<[1], [0], [0], [1], [0, 0, 1, 1], [], []>} : vector<1x128xf32>, vector<128x128xf32>, vector<1x128xf32> -> vector<1x128xf32>
    %cst_27 = arith.constant 0.001953125 : f32
    %28 = vector.broadcast %cst_27 : f32 to vector<1x128xf32>
    %29 = arith.mulf %27, %28 : vector<1x128xf32>
    %30 = arith.mulf %26, %26 : vector<1x128xf32>
    %31 = arith.subf %29, %30 : vector<1x128xf32>
    %cst_28 = arith.constant 0.000000e+00 : f32
    %32 = vector.broadcast %cst_28 : f32 to vector<1x128xf32>
    %33 = arith.maximumf %31, %32 : vector<1x128xf32>
    %cst_29 = arith.constant 9.99999974E-6 : f32
    %34 = vector.broadcast %cst_29 : f32 to vector<1x128xf32>
    %35 = arith.addf %33, %34 : vector<1x128xf32>
    %36 = math.rsqrt %35 : vector<1x128xf32>
    %37 = arith.mulf %17, %36 : vector<1x128xf32>
    %38 = arith.mulf %26, %37 : vector<1x128xf32>
    %39 = arith.subf %18, %38 : vector<1x128xf32>
    %40 = vector.broadcast %37 : vector<1x128xf32> to vector<32x128xf32>
    %41 = arith.mulf %16, %40 : vector<32x128xf32>
    %42 = vector.broadcast %39 : vector<1x128xf32> to vector<32x128xf32>
    %43 = arith.addf %41, %42 : vector<32x128xf32>
    %cst_30 = arith.constant 0.000000e+00 : f32
    %44 = vector.broadcast %cst_30 : f32 to vector<32x128xf32>
    %45 = arith.maximumf %43, %44 : vector<32x128xf32>
    %cst_31 = arith.constant dense<0.000000e+00> : vector<32x128xf32>
    %46 = tpu.matmul %8, %45, %cst_31 {dimension_numbers = #tpu.dot_dimension_numbers<[1], [0], [0], [1], [0, 0, 1, 1], [], []>} : vector<32x32xf32>, vector<32x128xf32>, vector<32x128xf32> -> vector<32x128xf32>
    %cst_32 = arith.constant dense<0.000000e+00> : vector<32x128xf32>
    %47 = tpu.matmul %7, %45, %cst_32 {dimension_numbers = #tpu.dot_dimension_numbers<[1], [0], [0], [1], [0, 0, 1, 1], [], []>} : vector<32x32xf32>, vector<32x128xf32>, vector<32x128xf32> -> vector<32x128xf32>
    %cst_33 = arith.constant dense<0.000000e+00> : vector<32x128xf32>
    %48 = tpu.matmul %46, %2, %cst_33 {dimension_numbers = #tpu.dot_dimension_numbers<[1], [0], [0], [1], [0, 0, 1, 1], [], []>} : vector<32x128xf32>, vector<128x128xf32>, vector<32x128xf32> -> vector<32x128xf32>
    %cst_34 = arith.constant dense<0.000000e+00> : vector<32x128xf32>
    %49 = tpu.matmul %45, %4, %cst_34 {dimension_numbers = #tpu.dot_dimension_numbers<[1], [0], [0], [1], [0, 0, 1, 1], [], []>} : vector<32x128xf32>, vector<128x128xf32>, vector<32x128xf32> -> vector<32x128xf32>
    %50 = arith.addf %48, %49 : vector<32x128xf32>
    %cst_35 = arith.constant dense<0.000000e+00> : vector<32x128xf32>
    %51 = tpu.matmul %47, %6, %cst_35 {dimension_numbers = #tpu.dot_dimension_numbers<[1], [0], [0], [1], [0, 0, 1, 1], [], []>} : vector<32x128xf32>, vector<128x128xf32>, vector<32x128xf32> -> vector<32x128xf32>
    %52 = arith.addf %50, %51 : vector<32x128xf32>
    %c0_36 = arith.constant 0 : index
    %c0_37 = arith.constant 0 : index
    %53 = vector.load %arg7[%c0_36, %c0_37] : memref<1x128xf32, #tpu.memory_space<vmem>>, vector<1x128xf32>
    %c0_38 = arith.constant 0 : index
    %c0_39 = arith.constant 0 : index
    %54 = vector.load %arg8[%c0_38, %c0_39] : memref<1x128xf32, #tpu.memory_space<vmem>>, vector<1x128xf32>
    %cst_40 = arith.constant dense<0.000000e+00> : vector<128xf32>
    %55 = vector.multi_reduction <add>, %52, %cst_40 [0] : vector<32x128xf32> to vector<128xf32>
    %56 = vector.shape_cast %55 : vector<128xf32> to vector<1x128xf32>
    %57 = arith.mulf %52, %52 : vector<32x128xf32>
    %cst_41 = arith.constant dense<0.000000e+00> : vector<128xf32>
    %58 = vector.multi_reduction <add>, %57, %cst_41 [0] : vector<32x128xf32> to vector<128xf32>
    %59 = vector.shape_cast %58 : vector<128xf32> to vector<1x128xf32>
    %cst_42 = arith.constant dense<0.000000e+00> : vector<1x128xf32>
    %60 = tpu.matmul %56, %9, %cst_42 {dimension_numbers = #tpu.dot_dimension_numbers<[1], [0], [0], [1], [0, 0, 1, 1], [], []>} : vector<1x128xf32>, vector<128x128xf32>, vector<1x128xf32> -> vector<1x128xf32>
    %cst_43 = arith.constant 0.001953125 : f32
    %61 = vector.broadcast %cst_43 : f32 to vector<1x128xf32>
    %62 = arith.mulf %60, %61 : vector<1x128xf32>
    %cst_44 = arith.constant dense<0.000000e+00> : vector<1x128xf32>
    %63 = tpu.matmul %59, %9, %cst_44 {dimension_numbers = #tpu.dot_dimension_numbers<[1], [0], [0], [1], [0, 0, 1, 1], [], []>} : vector<1x128xf32>, vector<128x128xf32>, vector<1x128xf32> -> vector<1x128xf32>
    %cst_45 = arith.constant 0.001953125 : f32
    %64 = vector.broadcast %cst_45 : f32 to vector<1x128xf32>
    %65 = arith.mulf %63, %64 : vector<1x128xf32>
    %66 = arith.mulf %62, %62 : vector<1x128xf32>
    %67 = arith.subf %65, %66 : vector<1x128xf32>
    %cst_46 = arith.constant 0.000000e+00 : f32
    %68 = vector.broadcast %cst_46 : f32 to vector<1x128xf32>
    %69 = arith.maximumf %67, %68 : vector<1x128xf32>
    %cst_47 = arith.constant 9.99999974E-6 : f32
    %70 = vector.broadcast %cst_47 : f32 to vector<1x128xf32>
    %71 = arith.addf %69, %70 : vector<1x128xf32>
    %72 = math.rsqrt %71 : vector<1x128xf32>
    %73 = arith.mulf %53, %72 : vector<1x128xf32>
    %74 = arith.mulf %62, %73 : vector<1x128xf32>
    %75 = arith.subf %54, %74 : vector<1x128xf32>
    %76 = vector.broadcast %73 : vector<1x128xf32> to vector<32x128xf32>
    %77 = arith.mulf %52, %76 : vector<32x128xf32>
    %78 = vector.broadcast %75 : vector<1x128xf32> to vector<32x128xf32>
    %79 = arith.addf %77, %78 : vector<32x128xf32>
    %80 = arith.addf %79, %0 : vector<32x128xf32>
    %cst_48 = arith.constant 0.000000e+00 : f32
    %81 = vector.broadcast %cst_48 : f32 to vector<32x128xf32>
    %82 = arith.maximumf %80, %81 : vector<32x128xf32>
    %c0_49 = arith.constant 0 : index
    %c0_50 = arith.constant 0 : index
    %83 = vector.load %arg9[%c0_49, %c0_50] : memref<32x128xf32, #tpu.memory_space<vmem>>, vector<32x128xf32>
    tpu.vector_store %arg9[%c0_49, %c0_50], %82 {strides = array<i32>} : memref<32x128xf32, #tpu.memory_space<vmem>>, vector<32x128xf32>,
    return
  }
}

</mosaic_0001>

<bundles_post_ra>
// kernel: tpu_custom_call.1
= control target key start
LH: loop header
LB: loop body
LE: loop exit
PB: predicated region body
PF: predicated region fallthrough
CT: control target
= control target key end

     0   :  { %14 = vsyncpa [#allocation3], 0  ;;  %s2961_s0 = inlined_call_operand.hbm [shape: f32[32,128], index: 0, kind: input, shape index: {}]   ;;  %s2962_s1 = inlined_call_operand.hbm [shape: f32[3,128,128], index: 1, kind: input, shape index: {}]   ;;  %s2963_s2 = inlined_call_operand.hbm [shape: f32[32,32], index: 2, kind: input, shape index: {}]   ;;  %s2964_s3 = inlined_call_operand.hbm [shape: f32[32,32], index: 3, kind: input, shape index: {}]   ;;  %s2965_s4 = inlined_call_operand.hbm [shape: f32[128,128], index: 4, kind: input, shape index: {}]   ;;  %s2966_s5 = inlined_call_operand.vmem [shape: f32[1,128], index: 5, kind: input, shape index: {}]   ;;  %s2967_s6 = inlined_call_operand.vmem [shape: f32[1,128], index: 6, kind: input, shape index: {}]   ;;  %s2968_s7 = inlined_call_operand.vmem [shape: f32[1,128], index: 7, kind: input, shape index: {}]   ;;  %s2969_s8 = inlined_call_operand.vmem [shape: f32[1,128], index: 8, kind: input, shape index: {}]   ;;  %s2970_s9 = inlined_call_operand.hbm [shape: f32[32,128], index: 9, kind: output, shape index: {}]  }
   0x1   :  { %15 = vsyncpa [#allocation6], 0 }
   0x2   :  { %16 = vsyncpa [#allocation9], 0 }
   0x3   :  { %17 = vsyncpa [#allocation4], 0  ;;  %s2291_s30 = smov [#allocation5]   ;;  %s2292_s11 = smov [#allocation8]  }
   0x4   :  { %s35_s10 = sshll.u32 %s2291_s30, 4  ;;  %s59_s12 = sshll.u32 %s2292_s11, 4  ;;  %s36_s10 = int_to_ptr.vmem [resolvable:$true] %s35_s10  ;;  %s60_s12 = int_to_ptr.vmem [resolvable:$true] %s59_s12 }
   0x5   :  { %s2171_s13 = scalar_lea.vmem %s36_s10, 6144  ;;  %p2176_p1 = scmp.lt.s32.totalorder %s36_s10, %s36_s10 }
   0x6   :  { %p2172_p0 = scmp.ne.s32.totalorder %s36_s10, %s2171_s13  ;;  %p2177_p2 = scmp.lt.s32.totalorder %s2171_s13, %s2171_s13 }
   0x8   :  { %p2178_p3 = por %p2177_p2, %p2176_p1 }
   0xa   :  { %p2179_p4 = pnand %p2178_p3, %p2172_p0 }
   0xc   :  { %2182 = shalt.err (!%p2179_p4)
}
   0xd   :  { %s2293_s14 = smov 128   ;;  %s2294_s15 = smov 8  }
   0xe   :  { %41 = dma.hbm_to_vmem [thread:$0]  %s2962_s1, 6144, %s36_s10, [#allocation6], %s2293_s14, %s2293_s14, %s2294_s15  }
   0xf   :  { %s2191_s18 = scalar_lea.vmem %s60_s12, 512  ;;  %p2196_p6 = scmp.lt.s32.totalorder %s60_s12, %s60_s12 }
  0x10   :  { %p2192_p5 = scmp.ne.s32.totalorder %s60_s12, %s2191_s18  ;;  %p2197_p7 = scmp.lt.s32.totalorder %s2191_s18, %s2191_s18 }
  0x12   :  { %p2198_p8 = por %p2197_p7, %p2196_p6 }
  0x14   :  { %p2199_p9 = pnand %p2198_p8, %p2192_p5 }
  0x16   :  { %2202 = shalt.err (!%p2199_p9)
}
  0x17   :  { %65 = dma.hbm_to_vmem [thread:$0]  %s2964_s3, 512, %s60_s12, [#allocation9], %s2293_s14, %s2293_s14, %s2294_s15  }
  0x18   :  { %s2295_s21 = smov [#allocation2]   ;;  %s2296_s23 = smov [#allocation7]  }
  0x19   :  { %s23_s22 = sshll.u32 %s2295_s21, 4  ;;  %s47_s24 = sshll.u32 %s2296_s23, 4  ;;  %s24_s22 = int_to_ptr.vmem [resolvable:$true] %s23_s22  ;;  %s48_s24 = int_to_ptr.vmem [resolvable:$true] %s47_s24 }
  0x1a   :  { %s2211_s1 = scalar_lea.vmem %s24_s22, 512  ;;  %p2216_p11 = scmp.lt.s32.totalorder %s24_s22, %s24_s22 }
  0x1b   :  { %p2212_p10 = scmp.ne.s32.totalorder %s24_s22, %s2211_s1  ;;  %p2217_p12 = scmp.lt.s32.totalorder %s2211_s1, %s2211_s1 }
  0x1d   :  { %p2218_p13 = por %p2217_p12, %p2216_p11 }
  0x1f   :  { %p2219_p0 = pnand %p2218_p13, %p2212_p10 }
  0x21   :  { %2222 = shalt.err (!%p2219_p0)
}
  0x22   :  { %29 = dma.hbm_to_vmem [thread:$0]  %s2961_s0, 512, %s24_s22, [#allocation3], %s2293_s14, %s2293_s14, %s2294_s15  }
  0x23   :  { %s2231_s3 = scalar_lea.vmem %s48_s24, 512  ;;  %p2236_p2 = scmp.lt.s32.totalorder %s48_s24, %s48_s24 }
  0x24   :  { %p2232_p1 = scmp.ne.s32.totalorder %s48_s24, %s2231_s3  ;;  %p2237_p3 = scmp.lt.s32.totalorder %s2231_s3, %s2231_s3 }
  0x26   :  { %p2238_p4 = por %p2237_p3, %p2236_p2 }
  0x28   :  { %p2239_p5 = pnand %p2238_p4, %p2232_p1 }
  0x2a   :  { %2242 = shalt.err (!%p2239_p5)
}
  0x2b   :  { %53 = dma.hbm_to_vmem [thread:$0]  %s2963_s2, 512, %s48_s24, [#allocation6], %s2293_s14, %s2293_s14, %s2294_s15  }
  0x2c   :  { %s2297_s29 = smov [#allocation10]  }
  0x2d   :  { %s71_s30 = sshll.u32 %s2297_s29, 4  ;;  %s72_s30 = int_to_ptr.vmem [resolvable:$true] %s71_s30 }
  0x2e   :  { %s2251_s10 = scalar_lea.vmem %s72_s30, 2048  ;;  %p2256_p7 = scmp.lt.s32.totalorder %s72_s30, %s72_s30 }
  0x2f   :  { %p2252_p6 = scmp.ne.s32.totalorder %s72_s30, %s2251_s10  ;;  %p2257_p8 = scmp.lt.s32.totalorder %s2251_s10, %s2251_s10 }
  0x31   :  { %p2258_p9 = por %p2257_p8, %p2256_p7 }
  0x33   :  { %p2259_p10 = pnand %p2258_p9, %p2252_p6 }
  0x35   :  { %2262 = shalt.err (!%p2259_p10)
}
  0x36   :  { %77 = dma.hbm_to_vmem [thread:$0]  %s2965_s4, 2048, %s72_s30, [#allocation9], %s2293_s14, %s2293_s14, %s2294_s15  }
  0x37   :  { %2283 = dma.done.wait [#allocation3], 512  }
  0x38   :  { %2284 = vsyncadd [#allocation3], 4294966784 }
  0x39   :  { %2285 = dma.done.wait [#allocation6], 6656  }
  0x3a   :  { %2286 = vsyncadd [#allocation6], 4294960640 }
  0x3b   :  { %2287 = dma.done.wait [#allocation9], 2560  }
  0x3c   :  { %2288 = vsyncadd [#allocation9], 4294964736  ;;  %vm179_vm0 = vcmask 261120   ;;  %v2381_v0 = vld [vmem:[#allocation2 + $0x18] sm:$0xff]  ;;  %v2383_v1 = vld [vmem:[#allocation2 + $0x10] sm:$0xff]  ;;  %vm2299_vm1 = vmmov 0  }
  0x3d   :  { %1721 = vmatprep.subr.mxu0 %v2381_v0  ;;  %v2386_v2 = vld [vmem:[#allocation8] sm:$0xff]  ;;  %v2389_v3 = vld [vmem:[#allocation2 + $0x8] sm:$0xff]  ;;  %v2399_v6 = vld [vmem:[#allocation8 + $0x10] sm:$0xff] }
  0x3e   :  { %1722 = vmatpush3.msra.mxu0 %v2381_v0  ;;  %1729 = vmatprep.mubr.msk.f32.mxu0 %vm179_vm0, %v2386_v2  ;;  %v101_v4 = vld [vmem:[#allocation2] sm:$0xff]  ;;  %v2397_v5 = vld [vmem:[#allocation8 + $0x8] sm:$0xff]  ;;  %v2401_v7 = vld [vmem:[#allocation5 + $0x78] sm:$0xff] }
  0x3f   :  { %1723 = vmatprep.subr.mxu0 %v2383_v1  ;;  %v2409_v8 = vld [vmem:[#allocation8 + $0x18] sm:$0xff]  ;;  %v2412_v9 = vld [vmem:[#allocation7] sm:$0xff]  ;;  %1787 = vmatprep.subr.mxu1 %v2401_v7  ;;  %v2417_v10 = vld [vmem:[#allocation5 + $0x70] sm:$0xff] }
  0x40   :  { %1724 = vmatpush3.msra.mxu0 %v2383_v1  ;;  %1788 = vmatpush3.msra.mxu1 %v2401_v7  ;;  %v2425_v11 = vld [vmem:[#allocation7 + $0x8] sm:$0xff]  ;;  %v2427_v12 = vld [vmem:[#allocation5 + $0xf8] sm:$0xff]  ;;  %v2429_v13 = vld [vmem:[#allocation7 + $0x10] sm:$0xff] }
  0x41   :  { %1725 = vmatprep.subr.mxu0 %v2389_v3  ;;  %1789 = vmatprep.subr.mxu1 %v2417_v10  ;;  %v2432_v14 = vld [vmem:[#allocation5 + $0xf0] sm:$0xff]  ;;  %v2435_v15 = vld [vmem:[#allocation5 + $0x68] sm:$0xff]  ;;  %v2442_v16 = vld [vmem:[#allocation7 + $0x18] sm:$0xff] }
  0x42   :  { %1726 = vmatpush3.msra.mxu0 %v2389_v3  ;;  %1790 = vmatpush3.msra.mxu1 %v2417_v10  ;;  %v2445_v17 = vld [vmem:[#allocation5 + $0xe8] sm:$0xff]  ;;  %v2450_v18 = vld [vmem:[#allocation5 + $0xe0] sm:$0xff]  ;;  %v2459_v20 = vld [vmem:[#allocation5 + $0xd8] sm:$0xff] }
  0x43   :  { %1727 = vmatprep.subr.mxu0 %v101_v4  ;;  %1791 = vmatprep.subr.mxu1 %v2435_v15  ;;  %v2453_v19 = vld [vmem:[#allocation5 + $0x60] sm:$0xff]  ;;  %v2461_v21 = vld [vmem:[#allocation5 + $0x58] sm:$0xff]  ;;  %v2466_v22 = vld [vmem:[#allocation5 + $0xd0] sm:$0xff] }
  0x44   :  { %1728 = vmatpush3.msra.mxu0 %v101_v4  ;;  %1792 = vmatpush3.msra.mxu1 %v2435_v15  ;;  %v2469_v23 = vld [vmem:[#allocation5 + $0x50] sm:$0xff]  ;;  %v2474_v24 = vld [vmem:[#allocation5 + $0xc8] sm:$0xff]  ;;  %v2482_v26 = vld [vmem:[#allocation5 + $0xc0] sm:$0xff] }
  0x45   :  { %1730 = vmatmul.mubr.msk.f32.vlgmr.msra.gmra.mxu0 %vm179_vm0, %v2397_v5  ;;  %1735 = vmatprep.subr.mxu0 %v2381_v0  ;;  %v2477_v25 = vld [vmem:[#allocation5 + $0x48] sm:$0xff]  ;;  %v2485_v27 = vld [vmem:[#allocation5 + $0x40] sm:$0xff]  ;;  %v2490_v28 = vld [vmem:[#allocation5 + $0xb8] sm:$0xff] }
  0x46   :  { %1736 = vmatpush3.msra.mxu0 %v2381_v0  ;;  %1732 = vmatprep.mubr.msk.f32.mxu0 %vm179_vm0, %v2399_v6  ;;  %v2493_v29 = vld [vmem:[#allocation5 + $0x38] sm:$0xff]  ;;  %v2498_v30 = vld [vmem:[#allocation5 + $0xb0] sm:$0xff]  ;;  %v2506_v32 = vld [vmem:[#allocation5 + $0xa8] sm:$0xff] }
  0x47   :  { %1737 = vmatprep.subr.mxu0 %v2383_v1  ;;  %1793 = vmatprep.subr.mxu1 %v2453_v19  ;;  %v2501_v31 = vld [vmem:[#allocation5 + $0x30] sm:$0xff]  ;;  %v2509_v33 = vld [vmem:[#allocation5 + $0x28] sm:$0xff]  ;;  %v2514_v34 = vld [vmem:[#allocation5 + $0xa0] sm:$0xff] }
  0x48   :  { %1738 = vmatpush3.msra.mxu0 %v2383_v1  ;;  %1794 = vmatpush3.msra.mxu1 %v2453_v19  ;;  %v2517_v35 = vld [vmem:[#allocation5 + $0x20] sm:$0xff]  ;;  %v2522_v36 = vld [vmem:[#allocation5 + $0x98] sm:$0xff]  ;;  %v2530_v38 = vld [vmem:[#allocation5 + $0x90] sm:$0xff] }
  0x49   :  { %1733 = vmatmul.mubr.msk.f32.gmra.mxu0 %vm179_vm0, %v2409_v8  ;;  %1739 = vmatprep.subr.mxu0 %v2389_v3  ;;  %v2525_v37 = vld [vmem:[#allocation5 + $0x18] sm:$0xff]  ;;  %v2533_v39 = vld [vmem:[#allocation5 + $0x10] sm:$0xff]  ;;  %v2538_v40 = vld [vmem:[#allocation5 + $0x88] sm:$0xff] }
  0x4a   :  { %1740 = vmatpush3.msra.mxu0 %v2389_v3  ;;  %1743 = vmatprep.mubr.msk.f32.mxu0 %vm179_vm0, %v2412_v9  ;;  %v2544_v41 = vld [vmem:[#allocation5 + $0x80] sm:$0xff]  ;;  %v2549_v42 = vld [vmem:[#allocation5 + $0x178] sm:$0xff]  ;;  %v2553_v43 = vld [vmem:[#allocation5 + $0x170] sm:$0xff] }
  0x4b   :  { %1741 = vmatprep.subr.mxu0 %v101_v4  ;;  %1795 = vmatprep.subr.mxu1 %v2461_v21  ;;  %3035 = vst [vmem:[#allocation16_spill] sm:$0xff] %v2553_v43  ;;  %v2558_v44 = vld [vmem:[#allocation5 + $0x168] sm:$0xff]  ;;  %v2563_v45 = vld [vmem:[#allocation5 + $0x160] sm:$0xff]  ;;  %v2568_v46 = vld [vmem:[#allocation5 + $0x158] sm:$0xff] }
  0x4c   :  { %1742 = vmatpush3.msra.mxu0 %v101_v4  ;;  %1796 = vmatpush3.msra.mxu1 %v2461_v21  ;;  %3036 = vst [vmem:[#allocation17_spill] sm:$0xff] %v2558_v44  ;;  %3037 = vst [vmem:[#allocation18_spill] sm:$0xff] %v2563_v45  ;;  %v2572_v47 = vld [vmem:[#allocation5 + $0x150] sm:$0xff]  ;;  %v2576_v48 = vld [vmem:[#allocation5 + $0x148] sm:$0xff] }
  0x4d   :  { %1744 = vmatmul.mubr.msk.f32.vlgmr.msra.gmra.mxu0 %vm179_vm0, %v2425_v11  ;;  %1749 = vmatprep.subr.mxu0 %v2427_v12  ;;  %3038 = vst [vmem:[#allocation19_spill] sm:$0xff] %v2568_v46  ;;  %3039 = vst [vmem:[#allocation20_spill] sm:$0xff] %v2572_v47  ;;  %v2580_v49 = vld [vmem:[#allocation5 + $0x140] sm:$0xff]  ;;  %v2584_v50 = vld [vmem:[#allocation5 + $0x138] sm:$0xff] }
  0x4e   :  { %1746 = vmatprep.mubr.msk.f32.mxu0 %vm179_vm0, %v2429_v13  ;;  %1750 = vmatpush3.msra.mxu0 %v2427_v12  ;;  %3040 = vst [vmem:[#allocation21_spill] sm:$0xff] %v2576_v48  ;;  %3041 = vst [vmem:[#allocation22_spill] sm:$0xff] %v2580_v49  ;;  %v2588_v51 = vld [vmem:[#allocation5 + $0x130] sm:$0xff]  ;;  %v2594_v52 = vld [vmem:[#allocation5 + $0x8] sm:$0xff] }
  0x4f   :  { %1751 = vmatprep.subr.mxu0 %v2432_v14  ;;  %1797 = vmatprep.subr.mxu1 %v2469_v23  ;;  %3042 = vst [vmem:[#allocation23_spill] sm:$0xff] %v2584_v50  ;;  %3043 = vst [vmem:[#allocation24_spill] sm:$0xff] %v2588_v51  ;;  %v2596_v53 = vld [vmem:[#allocation5 + $0x128] sm:$0xff]  ;;  %v2602_v54 = vld [vmem:[#allocation5] sm:$0xff] }
  0x50   :  { %1752 = vmatpush3.msra.mxu0 %v2432_v14  ;;  %1798 = vmatpush3.msra.mxu1 %v2469_v23  ;;  %3044 = vst [vmem:[#allocation25_spill] sm:$0xff] %v2596_v53  ;;  %v2604_v55 = vld [vmem:[#allocation5 + $0x120] sm:$0xff]  ;;  %v2610_v56 = vld [vmem:[#allocation5 + $0x118] sm:$0xff]  ;;  %v2614_v57 = vld [vmem:[#allocation5 + $0x110] sm:$0xff] }
  0x51   :  { %1747 = vmatmul.mubr.msk.f32.gmra.mxu0 %vm179_vm0, %v2442_v16  ;;  %1753 = vmatprep.subr.mxu0 %v2445_v17  ;;  %3045 = vst [vmem:[#allocation26_spill] sm:$0xff] %v2604_v55  ;;  %3046 = vst [vmem:[#allocation27_spill] sm:$0xff] %v2610_v56  ;;  %v2618_v58 = vld [vmem:[#allocation5 + $0x108] sm:$0xff]  ;;  %v2622_v59 = vld [vmem:[#allocation5 + $0x100] sm:$0xff] }
  0x52   :  { %1754 = vmatpush3.msra.mxu0 %v2445_v17  ;;  %1781 = vmatprep.mubr.f32.mxu0 %v101_v4  ;;  %3047 = vst [vmem:[#allocation28_spill] sm:$0xff] %v2614_v57  ;;  %3048 = vst [vmem:[#allocation29_spill] sm:$0xff] %v2618_v58 }
  0x53   :  { %1755 = vmatprep.subr.mxu0 %v2450_v18  ;;  %1799 = vmatprep.subr.mxu1 %v2477_v25  ;;  %3049 = vst [vmem:[#allocation30_spill] sm:$0xff] %v2622_v59 }
  0x54   :  { %1756 = vmatpush3.msra.mxu0 %v2450_v18  ;;  %1800 = vmatpush3.msra.mxu1 %v2477_v25 }
  0x55   :  { %1757 = vmatprep.subr.mxu0 %v2459_v20  ;;  %1801 = vmatprep.subr.mxu1 %v2485_v27 }
  0x56   :  { %1758 = vmatpush3.msra.mxu0 %v2459_v20  ;;  %1802 = vmatpush3.msra.mxu1 %v2485_v27 }
  0x57   :  { %1759 = vmatprep.subr.mxu0 %v2466_v22  ;;  %1803 = vmatprep.subr.mxu1 %v2493_v29 }
  0x58   :  { %1760 = vmatpush3.msra.mxu0 %v2466_v22  ;;  %1804 = vmatpush3.msra.mxu1 %v2493_v29 }
  0x59   :  { %1761 = vmatprep.subr.mxu0 %v2474_v24  ;;  %1805 = vmatprep.subr.mxu1 %v2501_v31 }
  0x5a   :  { %1762 = vmatpush3.msra.mxu0 %v2474_v24  ;;  %1806 = vmatpush3.msra.mxu1 %v2501_v31 }
  0x5b   :  { %1763 = vmatprep.subr.mxu0 %v2482_v26  ;;  %1807 = vmatprep.subr.mxu1 %v2509_v33 }
  0x5c   :  { %1764 = vmatpush3.msra.mxu0 %v2482_v26  ;;  %1808 = vmatpush3.msra.mxu1 %v2509_v33 }
  0x5d   :  { %1765 = vmatprep.subr.mxu0 %v2490_v28  ;;  %1809 = vmatprep.subr.mxu1 %v2517_v35 }
  0x5e   :  { %1766 = vmatpush3.msra.mxu0 %v2490_v28  ;;  %1810 = vmatpush3.msra.mxu1 %v2517_v35 }
  0x5f   :  { %1767 = vmatprep.subr.mxu0 %v2498_v30  ;;  %1811 = vmatprep.subr.mxu1 %v2525_v37 }
  0x60   :  { %1768 = vmatpush3.msra.mxu0 %v2498_v30  ;;  %1812 = vmatpush3.msra.mxu1 %v2525_v37 }
  0x61   :  { %1769 = vmatprep.subr.mxu0 %v2506_v32  ;;  %1813 = vmatprep.subr.mxu1 %v2533_v39 }
  0x62   :  { %1770 = vmatpush3.msra.mxu0 %v2506_v32  ;;  %1814 = vmatpush3.msra.mxu1 %v2533_v39 }
  0x63   :  { %1771 = vmatprep.subr.mxu0 %v2514_v34  ;;  %1815 = vmatprep.subr.mxu1 %v2594_v52 }
  0x64   :  { %1772 = vmatpush3.msra.mxu0 %v2514_v34  ;;  %1816 = vmatpush3.msra.mxu1 %v2594_v52 }
  0x65   :  { %1773 = vmatprep.subr.mxu0 %v2522_v36  ;;  %1817 = vmatprep.subr.mxu1 %v2602_v54 }
  0x66   :  { %1774 = vmatpush3.msra.mxu0 %v2522_v36  ;;  %1818 = vmatpush3.msra.mxu1 %v2602_v54 }
  0x67   :  { %1775 = vmatprep.subr.mxu0 %v2530_v38 }
  0x68   :  { %1776 = vmatpush3.msra.mxu0 %v2530_v38 }
  0x69   :  { %1777 = vmatprep.subr.mxu0 %v2538_v40 }
  0x6a   :  { %1778 = vmatpush3.msra.mxu0 %v2538_v40 }
  0x6b   :  { %1779 = vmatprep.subr.mxu0 %v2544_v41 }
  0x6c   :  { %1780 = vmatpush3.msra.mxu0 %v2544_v41 }
  0x6d   :  { %1782 = vmatmul.mubr.f32.vlgmr.msra.gmra.mxu0 %v2389_v3  ;;  %1825 = vmatprep.subr.mxu0 %v2549_v42 }
  0x6e   :  { %1826 = vmatpush3.msra.mxu0 %v2549_v42  ;;  %1784 = vmatprep.mubr.f32.mxu0 %v2383_v1 }
  0x6f   :  { %1827 = vmatprep.subr.mxu0 %v2553_v43 }
  0x70   :  { %1828 = vmatpush3.msra.mxu0 %v2553_v43 }
  0x71   :  { %1829 = vmatprep.subr.mxu0 %v2558_v44  ;;  %1785 = vmatmul.mubr.f32.gmra.mxu0 %v2381_v0 }
  0x72   :  { %1830 = vmatpush3.msra.mxu0 %v2558_v44 }
  0x73   :  { %1831 = vmatprep.subr.mxu0 %v2563_v45 }
  0x74   :  { %1832 = vmatpush3.msra.mxu0 %v2563_v45 }
  0x75   :  { %1833 = vmatprep.subr.mxu0 %v2568_v46 }
  0x76   :  { %1834 = vmatpush3.msra.mxu0 %v2568_v46 }
  0x77   :  { %1835 = vmatprep.subr.mxu0 %v2572_v47 }
  0x78   :  { %1836 = vmatpush3.msra.mxu0 %v2572_v47 }
  0x79   :  { %1837 = vmatprep.subr.mxu0 %v2576_v48 }
  0x7a   :  { %1838 = vmatpush3.msra.mxu0 %v2576_v48 }
  0x7b   :  { %1839 = vmatprep.subr.mxu0 %v2580_v49 }
  0x7c   :  { %1840 = vmatpush3.msra.mxu0 %v2580_v49 }
  0x7d   :  { %1841 = vmatprep.subr.mxu0 %v2584_v50 }
  0x7e   :  { %1842 = vmatpush3.msra.mxu0 %v2584_v50 }
  0x7f   :  { %1843 = vmatprep.subr.mxu0 %v2588_v51 }
  0x80   :  { %1844 = vmatpush3.msra.mxu0 %v2588_v51 }
  0x81   :  { %1845 = vmatprep.subr.mxu0 %v2596_v53 }
  0x82   :  { %1846 = vmatpush3.msra.mxu0 %v2596_v53 }
  0x83   :  { %1847 = vmatprep.subr.mxu0 %v2604_v55 }
  0x84   :  { %1848 = vmatpush3.msra.mxu0 %v2604_v55 }
  0x85   :  { %1849 = vmatprep.subr.mxu0 %v2610_v56 }
  0x86   :  { %1850 = vmatpush3.msra.mxu0 %v2610_v56 }
  0x87   :  { %1851 = vmatprep.subr.mxu0 %v2614_v57 }
  0x88   :  { %1852 = vmatpush3.msra.mxu0 %v2614_v57 }
  0x89   :  { %1853 = vmatprep.subr.mxu0 %v2618_v58 }
  0x8a   :  { %1854 = vmatpush3.msra.mxu0 %v2618_v58  ;;  %v3019_v58 = vmov 0.0  }
  0x8b   :  { %1855 = vmatprep.subr.mxu0 %v2622_v59  ;;  %1863 = vmatprep.subr.mxu1 %v3019_v58 }
  0x8c   :  { %1856 = vmatpush3.msra.mxu0 %v2622_v59  ;;  %v2627_v59 = vld [vmem:[#allocation10 + $0x78] sm:$0xff] }
  0x8d   :  { %3050 = vst [vmem:[#allocation31_spill] sm:$0xff] %v2627_v59  ;;  %1898 = vmatprep.subr.mxu0 %v3019_v58 }
 0x105   :  { %v1731_v60 = vpop.f32.mrf.mxu0 }
 0x107   :  { %v258_v61 = vpop.f32.mrf.mxu0 }
 0x108   :  { %1819 = vmatprep.mubr.f32.mxu1 %v258_v61  ;;  %v2639_v61 = vld [vmem:[#allocation10 + $0x68] sm:$0xff] }
 0x109   :  { %v1734_v62 = vpop.f32.mrf.mxu0  ;;  %1820 = vmatmul.mubr.f32.vlgmr.msra.gmra.mxu1 %v1731_v60  ;;  %v2633_v60 = vld [vmem:[#allocation10 + $0x70] sm:$0xff]  ;;  %3052 = vst [vmem:[#allocation33_spill] sm:$0xff] %v2639_v61 }
 0x10a   :  { %1864 = vmatpush3.msra.mxu1 %v2627_v59  ;;  %3051 = vst [vmem:[#allocation32_spill] sm:$0xff] %v2633_v60 }
 0x10b   :  { %v268_v63 = vpop.f32.mrf.mxu0  ;;  %1865 = vmatprep.subr.mxu1 %v3019_v58 }
 0x10c   :  { %1822 = vmatprep.mubr.f32.mxu1 %v268_v63  ;;  %1866 = vmatpush3.msra.mxu1 %v2633_v60  ;;  %v2651_v63 = vld [vmem:[#allocation10 + $0x58] sm:$0xff] }
 0x10d   :  { %v1745_v0 = vpop.f32.mrf.mxu0  ;;  %1823 = vmatmul.mubr.f32.gmra.mxu1 %v1734_v62  ;;  %1867 = vmatprep.subr.mxu1 %v3019_v58  ;;  %v2645_v62 = vld [vmem:[#allocation10 + $0x60] sm:$0xff]  ;;  %3054 = vst [vmem:[#allocation35_spill] sm:$0xff] %v2651_v63 }
 0x10e   :  { %1868 = vmatpush3.msra.mxu1 %v2639_v61  ;;  %3053 = vst [vmem:[#allocation34_spill] sm:$0xff] %v2645_v62  ;;  %1895 = vmatprep.mubr.msk.f32.mxu1 %vm2299_vm1, %v3019_v58 }
 0x10f   :  { %v355_v1 = vpop.f32.mrf.mxu0  ;;  %1869 = vmatprep.subr.mxu1 %v3019_v58 }
 0x110   :  { %1857 = vmatprep.mubr.f32.mxu0 %v355_v1  ;;  %1870 = vmatpush3.msra.mxu1 %v2645_v62  ;;  %v2663_v1 = vld [vmem:[#allocation10 + $0x48] sm:$0xff] }
 0x111   :  { %v1748_v3 = vpop.f32.mrf.mxu0  ;;  %1858 = vmatmul.mubr.f32.vlgmr.msra.gmra.mxu0 %v1745_v0  ;;  %1871 = vmatprep.subr.mxu1 %v3019_v58  ;;  %v2657_v0 = vld [vmem:[#allocation10 + $0x50] sm:$0xff]  ;;  %3056 = vst [vmem:[#allocation37_spill] sm:$0xff] %v2663_v1 }
 0x112   :  { %1899 = vmatpush3.msra.mxu0 %v2627_v59  ;;  %1872 = vmatpush3.msra.mxu1 %v2651_v63  ;;  %3055 = vst [vmem:[#allocation36_spill] sm:$0xff] %v2657_v0 }
 0x113   :  { %v365_v4 = vpop.f32.mrf.mxu0  ;;  %1900 = vmatprep.subr.mxu0 %v3019_v58  ;;  %1873 = vmatprep.subr.mxu1 %v3019_v58 }
 0x114   :  { %1860 = vmatprep.mubr.f32.mxu0 %v365_v4  ;;  %1901 = vmatpush3.msra.mxu0 %v2633_v60  ;;  %v2675_v4 = vld [vmem:[#allocation10 + $0x38] sm:$0xff] }
 0x115   :  { %1861 = vmatmul.mubr.f32.gmra.mxu0 %v1748_v3  ;;  %1902 = vmatprep.subr.mxu0 %v3019_v58  ;;  %v2669_v3 = vld [vmem:[#allocation10 + $0x40] sm:$0xff]  ;;  %3058 = vst [vmem:[#allocation39_spill] sm:$0xff] %v2675_v4 }
 0x116   :  { %1903 = vmatpush3.msra.mxu0 %v2639_v61  ;;  %1874 = vmatpush3.msra.mxu1 %v2657_v0  ;;  %3057 = vst [vmem:[#allocation38_spill] sm:$0xff] %v2669_v3 }
 0x117   :  { %1904 = vmatprep.subr.mxu0 %v3019_v58  ;;  %1875 = vmatprep.subr.mxu1 %v3019_v58 }
 0x118   :  { %1905 = vmatpush3.msra.mxu0 %v2645_v62  ;;  %1876 = vmatpush3.msra.mxu1 %v2663_v1 }
 0x119   :  { %1906 = vmatprep.subr.mxu0 %v3019_v58  ;;  %1877 = vmatprep.subr.mxu1 %v3019_v58 }
 0x11a   :  { %1907 = vmatpush3.msra.mxu0 %v2651_v63  ;;  %1878 = vmatpush3.msra.mxu1 %v2669_v3 }
 0x11b   :  { %1908 = vmatprep.subr.mxu0 %v3019_v58  ;;  %1879 = vmatprep.subr.mxu1 %v3019_v58 }
 0x11c   :  { %1909 = vmatpush3.msra.mxu0 %v2657_v0  ;;  %1880 = vmatpush3.msra.mxu1 %v2675_v4  ;;  %v2714_v0 = vld [vmem:[#allocation10] sm:$0xff] }
 0x11d   :  { %1910 = vmatprep.subr.mxu0 %v3019_v58  ;;  %1881 = vmatprep.subr.mxu1 %v3019_v58  ;;  %3065 = vst [vmem:[#allocation46_spill] sm:$0xff] %v2714_v0 }
 0x11e   :  { %1911 = vmatpush3.msra.mxu0 %v2663_v1  ;;  %v2681_v1 = vld [vmem:[#allocation10 + $0x30] sm:$0xff]  ;;  %1930 = vmatprep.mubr.msk.f32.mxu0 %vm2299_vm1, %v3019_v58 }
 0x11f   :  { %1912 = vmatprep.subr.mxu0 %v3019_v58  ;;  %3059 = vst [vmem:[#allocation40_spill] sm:$0xff] %v2681_v1  ;;  %1882 = vmatpush3.msra.mxu1 %v2681_v1 }
 0x120   :  { %1913 = vmatpush3.msra.mxu0 %v2669_v3  ;;  %1883 = vmatprep.subr.mxu1 %v3019_v58  ;;  %v2687_v3 = vld [vmem:[#allocation10 + $0x28] sm:$0xff] }
 0x121   :  { %1914 = vmatprep.subr.mxu0 %v3019_v58  ;;  %3060 = vst [vmem:[#allocation41_spill] sm:$0xff] %v2687_v3  ;;  %1884 = vmatpush3.msra.mxu1 %v2687_v3 }
 0x122   :  { %1915 = vmatpush3.msra.mxu0 %v2675_v4  ;;  %1885 = vmatprep.subr.mxu1 %v3019_v58  ;;  %v2693_v4 = vld [vmem:[#allocation10 + $0x20] sm:$0xff] }
 0x123   :  { %1916 = vmatprep.subr.mxu0 %v3019_v58  ;;  %3061 = vst [vmem:[#allocation42_spill] sm:$0xff] %v2693_v4  ;;  %1886 = vmatpush3.msra.mxu1 %v2693_v4 }
 0x124   :  { %1917 = vmatpush3.msra.mxu0 %v2681_v1  ;;  %1887 = vmatprep.subr.mxu1 %v3019_v58  ;;  %v2699_v1 = vld [vmem:[#allocation10 + $0x18] sm:$0xff] }
 0x125   :  { %1918 = vmatprep.subr.mxu0 %v3019_v58  ;;  %3062 = vst [vmem:[#allocation43_spill] sm:$0xff] %v2699_v1  ;;  %1888 = vmatpush3.msra.mxu1 %v2699_v1 }
 0x126   :  { %1919 = vmatpush3.msra.mxu0 %v2687_v3  ;;  %1889 = vmatprep.subr.mxu1 %v3019_v58  ;;  %v2705_v3 = vld [vmem:[#allocation10 + $0x10] sm:$0xff] }
 0x127   :  { %1920 = vmatprep.subr.mxu0 %v3019_v58  ;;  %3063 = vst [vmem:[#allocation44_spill] sm:$0xff] %v2705_v3  ;;  %1890 = vmatpush3.msra.mxu1 %v2705_v3 }
 0x128   :  { %1921 = vmatpush3.msra.mxu0 %v2693_v4  ;;  %1891 = vmatprep.subr.mxu1 %v3019_v58  ;;  %v2711_v4 = vld [vmem:[#allocation10 + $0x8] sm:$0xff] }
 0x129   :  { %1922 = vmatprep.subr.mxu0 %v3019_v58  ;;  %3064 = vst [vmem:[#allocation45_spill] sm:$0xff] %v2711_v4  ;;  %1892 = vmatpush3.msra.mxu1 %v2711_v4 }
 0x12a   :  { %1923 = vmatpush3.msra.mxu0 %v2699_v1  ;;  %1893 = vmatprep.subr.mxu1 %v3019_v58 }
 0x12b   :  { %1924 = vmatprep.subr.mxu0 %v3019_v58  ;;  %1894 = vmatpush3.msra.mxu1 %v2714_v0 }
 0x12c   :  { %1925 = vmatpush3.msra.mxu0 %v2705_v3 }
 0x12d   :  { %1926 = vmatprep.subr.mxu0 %v3019_v58  ;;  %v1783_v3 = vpop.f32.mrf.mxu0 }
 0x12e   :  { %1927 = vmatpush3.msra.mxu0 %v2711_v4 }
 0x12f   :  { %1928 = vmatprep.subr.mxu0 %v3019_v58  ;;  %v440_v1 = vpop.f32.mrf.mxu0 }
 0x130   :  { %1929 = vmatpush3.msra.mxu0 %v2714_v0 }
 0x131   :  { %1999 = vmatprep.subr.mxu0 %v2401_v7  ;;  %v1786_v62 = vpop.f32.mrf.mxu0 }
 0x133   :  { %v450_v60 = vpop.f32.mrf.mxu0 }
 0x1c9   :  { %v1821_v63 = vpop.f32.mrf.mxu1 }
 0x1ca   :  { %v531_v4 = vadd.f32 %v1821_v63, %v1783_v3 }
 0x1cb   :  { %v525_v61 = vpop.f32.mrf.mxu1 }
 0x1cc   :  { %v526_v56 = vadd.f32 %v525_v61, %v440_v1 }
 0x1cd   :  { %v1824_v59 = vpop.f32.mrf.mxu1 }
 0x1ce   :  { %v541_v58 = vadd.f32 %v1824_v59, %v1786_v62 }
 0x1cf   :  { %v535_v55 = vpop.f32.mrf.mxu1 }
 0x1d0   :  { %v536_v49 = vadd.f32 %v535_v55, %v450_v60 }
 0x1d1   :  { %v1859_v57 = vpop.f32.mrf.mxu0 }
 0x1d2   :  { %v2727_v51 = vadd.f32 %v1859_v57, %v531_v4 }
 0x1d3   :  { %v610_v53 = vpop.f32.mrf.mxu0 }
 0x1d4   :  { %v2729_v0 = vadd.f32 %v610_v53, %v526_v56  ;;  %v645_v46 = vmul.f32 %v2727_v51, %v2727_v51 }
 0x1d5   :  { %v1862_v50 = vpop.f32.mrf.mxu0 }
 0x1d6   :  { %v644_v48 = vmul.f32 %v2729_v0, %v2729_v0  ;;  %v635_v63 = vadd.f32 %v2727_v51, %v2729_v0  ;;  %v2737_v61 = vadd.f32 %v1862_v50, %v541_v58 }
 0x1d7   :  { %v620_v47 = vpop.f32.mrf.mxu0 }
 0x1d8   :  { %v2739_v1 = vadd.f32 %v620_v47, %v536_v49  ;;  %v648_v57 = vadd.f32 %v645_v46, %v644_v48  ;;  %v647_v56 = vmul.f32 %v2737_v61, %v2737_v61 }
 0x1da   :  { %v636_v53 = vadd.f32 %v635_v63, %v2739_v1  ;;  %v646_v55 = vmul.f32 %v2739_v1, %v2739_v1 }
 0x1dc   :  { %v637_v59 = vadd.f32 %v636_v53, %v2737_v61  ;;  %v649_v60 = vadd.f32 %v648_v57, %v646_v55 }
 0x1de   :  { %v638_v62 = vrot.slane %v637_v59, 4  ;;  %v650_v3 = vadd.f32 %v649_v60, %v647_v56 }
 0x1e0   :  { %v639_v4 = vadd.f32 %v638_v62, %v637_v59  ;;  %v651_v45 = vrot.slane %v650_v3, 4 }
 0x1e2   :  { %v640_v50 = vrot.slane %v639_v4, 2  ;;  %v652_v58 = vadd.f32 %v651_v45, %v650_v3  ;;  %v634_v45 = vld [vmem:[%s2967_s6] sm:$0x1] }
 0x1e4   :  { %v641_v47 = vadd.f32 %v640_v50, %v639_v4  ;;  %v653_v49 = vrot.slane %v652_v58, 2 }
 0x1e6   :  { %v642_v46 = vrot.slane %v641_v47, 1  ;;  %v654_v48 = vadd.f32 %v653_v49, %v652_v58  ;;  %v3086_v49 = vld [vmem:[#allocation35_spill] sm:$0xff] }
 0x1e8   :  { %v643_v63 = vadd.f32 %v642_v46, %v641_v47  ;;  %v655_v44 = vrot.slane %v654_v48, 1 }
 0x1ea   :  { %1896 = vmatmul.mubr.f32.vlgmr.msra.gmra.mxu1 %v643_v63  ;;  %v656_v43 = vadd.f32 %v655_v44, %v654_v48  ;;  %v3087_v48 = vld [vmem:[#allocation36_spill] sm:$0xff]  ;;  %v3088_v63 = vld [vmem:[#allocation37_spill] sm:$0xff] }
 0x1eb   :  { %1941 = vmatprep.mubr.msk.f32.mxu1 %vm179_vm0, %v2386_v2  ;;  %v3066_v2 = vmov 0.0  }
 0x1ec   :  { %1931 = vmatmul.mubr.f32.vlgmr.msra.gmra.mxu0 %v656_v43 }
 0x1ed   :  { %2000 = vmatpush3.msra.mxu0 %v2401_v7 }
 0x1ee   :  { %2001 = vmatprep.subr.mxu0 %v2417_v10 }
 0x1ef   :  { %2002 = vmatpush3.msra.mxu0 %v2417_v10 }
 0x1f0   :  { %2003 = vmatprep.subr.mxu0 %v2435_v15 }
 0x1f1   :  { %2004 = vmatpush3.msra.mxu0 %v2435_v15 }
 0x1f2   :  { %2005 = vmatprep.subr.mxu0 %v2453_v19 }
 0x1f3   :  { %2006 = vmatpush3.msra.mxu0 %v2453_v19 }
 0x1f4   :  { %2007 = vmatprep.subr.mxu0 %v2461_v21 }
 0x1f5   :  { %2008 = vmatpush3.msra.mxu0 %v2461_v21 }
 0x1f6   :  { %2009 = vmatprep.subr.mxu0 %v2469_v23 }
 0x1f7   :  { %2010 = vmatpush3.msra.mxu0 %v2469_v23 }
 0x1f8   :  { %2011 = vmatprep.subr.mxu0 %v2477_v25 }
 0x1f9   :  { %2012 = vmatpush3.msra.mxu0 %v2477_v25 }
 0x1fa   :  { %2013 = vmatprep.subr.mxu0 %v2485_v27 }
 0x1fb   :  { %2014 = vmatpush3.msra.mxu0 %v2485_v27 }
 0x1fc   :  { %2015 = vmatprep.subr.mxu0 %v2493_v29 }
 0x1fd   :  { %2016 = vmatpush3.msra.mxu0 %v2493_v29 }
 0x1fe   :  { %2017 = vmatprep.subr.mxu0 %v2501_v31 }
 0x1ff   :  { %2018 = vmatpush3.msra.mxu0 %v2501_v31 }
 0x200   :  { %2019 = vmatprep.subr.mxu0 %v2509_v33 }
 0x201   :  { %2020 = vmatpush3.msra.mxu0 %v2509_v33  ;;  %v808_v33 = vlaneseq }
 0x202   :  { %2021 = vmatprep.subr.mxu0 %v2517_v35 }
 0x203   :  { %2022 = vmatpush3.msra.mxu0 %v2517_v35  ;;  %v809_v35 = vshrl.u32 %v808_v33, 7 }
 0x204   :  { %2023 = vmatprep.subr.mxu0 %v2525_v37 }
 0x205   :  { %2024 = vmatpush3.msra.mxu0 %v2525_v37  ;;  %v633_v37 = vld [vmem:[%s2966_s5] sm:$0x1] }
 0x206   :  { %2025 = vmatprep.subr.mxu0 %v2533_v39 }
 0x207   :  { %2026 = vmatpush3.msra.mxu0 %v2533_v39  ;;  %v2784_v39 = vsub.s32 0, %v809_v35 }
 0x208   :  { %2027 = vmatprep.subr.mxu0 %v2594_v52 }
 0x209   :  { %2028 = vmatpush3.msra.mxu0 %v2594_v52 }
 0x20a   :  { %2029 = vmatprep.subr.mxu0 %v2602_v54 }
 0x20b   :  { %2030 = vmatpush3.msra.mxu0 %v2602_v54 }
 0x20c   :  { %2075 = vmatprep.subr.mxu0 %v3066_v2 }
 0x2aa   :  { %v723_v7 = vpop.f32.mrf.mxu1 }
 0x2ab   :  { %v727_v10 = vmul.f32 0.001953125, %v723_v7  ;;  %v3089_v7 = vld [vmem:[#allocation38_spill] sm:$0xff] }
 0x2ac   :  { %v1897_v15 = vpop.f32.mrf.mxu1  ;;  %v794_v19 = vpop.f32.mrf.mxu0 }
 0x2ad   :  { %v799_v21 = vmul.f32 %v727_v10, %v727_v10  ;;  %v798_v23 = vmul.f32 0.001953125, %v794_v19  ;;  %v3091_v15 = vld [vmem:[#allocation40_spill] sm:$0xff]  ;;  %v3092_v19 = vld [vmem:[#allocation41_spill] sm:$0xff] }
 0x2ae   :  { %v1932_v25 = vpop.f32.mrf.mxu0 }
 0x2af   :  { %v800_v27 = vsub.f32 %v798_v23, %v799_v21  ;;  %v3093_v21 = vld [vmem:[#allocation42_spill] sm:$0xff]  ;;  %v3094_v23 = vld [vmem:[#allocation43_spill] sm:$0xff]  ;;  %v3095_v25 = vld [vmem:[#allocation44_spill] sm:$0xff] }
 0x2b1   :  { %v801_v29 = vmax.f32 %v800_v27, 0.0  ;;  %v3096_v27 = vld [vmem:[#allocation45_spill] sm:$0xff] }
 0x2b3   :  { %v802_v31 = vadd.f32 1e-05, %v801_v29  ;;  %v3097_v29 = vld [vmem:[#allocation46_spill] sm:$0xff] }
 0x2b5   :  { %2155 = vrsqrt.f32 %v802_v31 }
 0x2c2   :  { %v2156_v43 = vpop.eup %2155 }
 0x2c3   :  { %v804_v44 = vmul.f32 %v2156_v43, %v633_v37 }
 0x2c5   :  { %v805_v52 = vmul.f32 %v804_v44, %v727_v10  ;;  %v811_v54 = vrot.slane %v804_v44, %v2784_v39  ;;  %v3090_v10 = vld [vmem:[#allocation39_spill] sm:$0xff] }
 0x2c7   :  { %v806_v57 = vsub.f32 %v634_v45, %v805_v52  ;;  %v816_v53 = vmul.f32 %v811_v54, %v2737_v61  ;;  %v815_v56 = vmul.f32 %v811_v54, %v2739_v1  ;;  %v814_v62 = vmul.f32 %v811_v54, %v2727_v51  ;;  %v3085_v51 = vld [vmem:[#allocation34_spill] sm:$0xff] }
 0x2c8   :  { %v813_v50 = vmul.f32 %v811_v54, %v2729_v0 }
 0x2c9   :  { %v821_v55 = vrot.slane %v806_v57, %v2784_v39 }
 0x2cb   :  { %v826_v59 = vadd.f32 %v821_v55, %v816_v53  ;;  %v825_v60 = vadd.f32 %v821_v55, %v815_v56  ;;  %v824_v4 = vadd.f32 %v821_v55, %v814_v62  ;;  %v823_v47 = vadd.f32 %v821_v55, %v813_v50 }
 0x2cd   :  { %v2794_v3 = vmax.f32 %v826_v59, 0.0  ;;  %v829_v58 = vmax.f32 %v825_v60, 0.0  ;;  %v828_v61 = vmax.f32 %v824_v4, 0.0  ;;  %v827_v1 = vmax.f32 %v823_v47, 0.0 }
 0x2cf   :  { %1933 = vmatprep.subr.mxu1 %v2794_v3 }
 0x2d0   :  { %1934 = vmatpush3.msra.mxu1 %v2794_v3 }
 0x2d1   :  { %1935 = vmatprep.subr.mxu1 %v829_v58 }
 0x2d2   :  { %1936 = vmatpush3.msra.mxu1 %v829_v58 }
 0x2d3   :  { %1937 = vmatprep.subr.mxu1 %v828_v61 }
 0x2d4   :  { %1938 = vmatpush3.msra.mxu1 %v828_v61 }
 0x2d5   :  { %1939 = vmatprep.subr.mxu1 %v827_v1 }
 0x2d6   :  { %1940 = vmatpush3.msra.mxu1 %v827_v1 }
 0x2d7   :  { %1942 = vmatmul.mubr.msk.f32.vlgmr.msra.gmra.mxu1 %vm179_vm0, %v2397_v5  ;;  %1947 = vmatprep.subr.mxu1 %v2794_v3  ;;  %v3067_v5 = vld [vmem:[#allocation16_spill] sm:$0xff] }
 0x2d8   :  { %1948 = vmatpush3.msra.mxu1 %v2794_v3  ;;  %1944 = vmatprep.mubr.msk.f32.mxu1 %vm179_vm0, %v2399_v6  ;;  %v3068_v6 = vld [vmem:[#allocation17_spill] sm:$0xff] }
 0x2d9   :  { %1949 = vmatprep.subr.mxu1 %v829_v58 }
 0x2da   :  { %1950 = vmatpush3.msra.mxu1 %v829_v58 }
 0x2db   :  { %1945 = vmatmul.mubr.msk.f32.gmra.mxu1 %vm179_vm0, %v2409_v8  ;;  %1951 = vmatprep.subr.mxu1 %v828_v61  ;;  %v3069_v8 = vld [vmem:[#allocation18_spill] sm:$0xff] }
 0x2dc   :  { %1952 = vmatpush3.msra.mxu1 %v828_v61  ;;  %1955 = vmatprep.mubr.msk.f32.mxu1 %vm179_vm0, %v2412_v9  ;;  %v3070_v9 = vld [vmem:[#allocation19_spill] sm:$0xff] }
 0x2dd   :  { %1953 = vmatprep.subr.mxu1 %v827_v1 }
 0x2de   :  { %1954 = vmatpush3.msra.mxu1 %v827_v1 }
 0x2df   :  { %1956 = vmatmul.mubr.msk.f32.vlgmr.msra.gmra.mxu1 %vm179_vm0, %v2425_v11  ;;  %1961 = vmatprep.subr.mxu1 %v2427_v12  ;;  %v3071_v11 = vld [vmem:[#allocation20_spill] sm:$0xff] }
 0x2e0   :  { %1962 = vmatpush3.msra.mxu1 %v2427_v12  ;;  %1958 = vmatprep.mubr.msk.f32.mxu1 %vm179_vm0, %v2429_v13  ;;  %v3072_v12 = vld [vmem:[#allocation21_spill] sm:$0xff]  ;;  %v3073_v13 = vld [vmem:[#allocation22_spill] sm:$0xff] }
 0x2e1   :  { %1963 = vmatprep.subr.mxu1 %v2432_v14 }
 0x2e2   :  { %1964 = vmatpush3.msra.mxu1 %v2432_v14  ;;  %v3074_v14 = vld [vmem:[#allocation23_spill] sm:$0xff] }
 0x2e3   :  { %1959 = vmatmul.mubr.msk.f32.gmra.mxu1 %vm179_vm0, %v2442_v16  ;;  %1965 = vmatprep.subr.mxu1 %v2445_v17  ;;  %v3075_v16 = vld [vmem:[#allocation24_spill] sm:$0xff] }
 0x2e4   :  { %1966 = vmatpush3.msra.mxu1 %v2445_v17  ;;  %1993 = vmatprep.mubr.f32.mxu1 %v827_v1  ;;  %v3076_v17 = vld [vmem:[#allocation25_spill] sm:$0xff] }
 0x2e5   :  { %1967 = vmatprep.subr.mxu1 %v2450_v18 }
 0x2e6   :  { %1968 = vmatpush3.msra.mxu1 %v2450_v18  ;;  %v3077_v18 = vld [vmem:[#allocation26_spill] sm:$0xff] }
 0x2e7   :  { %1969 = vmatprep.subr.mxu1 %v2459_v20 }
 0x2e8   :  { %1970 = vmatpush3.msra.mxu1 %v2459_v20  ;;  %v3078_v20 = vld [vmem:[#allocation27_spill] sm:$0xff] }
 0x2e9   :  { %1971 = vmatprep.subr.mxu1 %v2466_v22 }
 0x2ea   :  { %1972 = vmatpush3.msra.mxu1 %v2466_v22  ;;  %v3079_v22 = vld [vmem:[#allocation28_spill] sm:$0xff] }
 0x2eb   :  { %1973 = vmatprep.subr.mxu1 %v2474_v24 }
 0x2ec   :  { %1974 = vmatpush3.msra.mxu1 %v2474_v24  ;;  %v3080_v24 = vld [vmem:[#allocation29_spill] sm:$0xff] }
 0x2ed   :  { %1975 = vmatprep.subr.mxu1 %v2482_v26 }
 0x2ee   :  { %1976 = vmatpush3.msra.mxu1 %v2482_v26  ;;  %v3081_v26 = vld [vmem:[#allocation30_spill] sm:$0xff] }
 0x2ef   :  { %1977 = vmatprep.subr.mxu1 %v2490_v28 }
 0x2f0   :  { %1978 = vmatpush3.msra.mxu1 %v2490_v28 }
 0x2f1   :  { %1979 = vmatprep.subr.mxu1 %v2498_v30 }
 0x2f2   :  { %1980 = vmatpush3.msra.mxu1 %v2498_v30 }
 0x2f3   :  { %1981 = vmatprep.subr.mxu1 %v2506_v32 }
 0x2f4   :  { %1982 = vmatpush3.msra.mxu1 %v2506_v32 }
 0x2f5   :  { %1983 = vmatprep.subr.mxu1 %v2514_v34 }
 0x2f6   :  { %1984 = vmatpush3.msra.mxu1 %v2514_v34  ;;  %v3082_v34 = vld [vmem:[#allocation31_spill] sm:$0xff] }
 0x2f7   :  { %1985 = vmatprep.subr.mxu1 %v2522_v36 }
 0x2f8   :  { %1986 = vmatpush3.msra.mxu1 %v2522_v36 }
 0x2f9   :  { %1987 = vmatprep.subr.mxu1 %v2530_v38 }
 0x2fa   :  { %1988 = vmatpush3.msra.mxu1 %v2530_v38  ;;  %v3083_v38 = vld [vmem:[#allocation32_spill] sm:$0xff] }
 0x2fb   :  { %1989 = vmatprep.subr.mxu1 %v2538_v40 }
 0x2fc   :  { %1990 = vmatpush3.msra.mxu1 %v2538_v40 }
 0x2fd   :  { %1991 = vmatprep.subr.mxu1 %v2544_v41 }
 0x2fe   :  { %1992 = vmatpush3.msra.mxu1 %v2544_v41  ;;  %v3084_v41 = vld [vmem:[#allocation33_spill] sm:$0xff] }
 0x2ff   :  { %1994 = vmatmul.mubr.f32.vlgmr.msra.gmra.mxu1 %v828_v61  ;;  %2037 = vmatprep.subr.mxu1 %v2549_v42 }
 0x300   :  { %1996 = vmatprep.mubr.f32.mxu1 %v829_v58  ;;  %2038 = vmatpush3.msra.mxu1 %v2549_v42 }
 0x301   :  { %2039 = vmatprep.subr.mxu1 %v3067_v5 }
 0x302   :  { %2040 = vmatpush3.msra.mxu1 %v3067_v5 }
 0x303   :  { %1997 = vmatmul.mubr.f32.gmra.mxu1 %v2794_v3  ;;  %2041 = vmatprep.subr.mxu1 %v3068_v6 }
 0x304   :  { %2042 = vmatpush3.msra.mxu1 %v3068_v6 }
 0x305   :  { %2043 = vmatprep.subr.mxu1 %v3069_v8 }
 0x306   :  { %2044 = vmatpush3.msra.mxu1 %v3069_v8 }
 0x307   :  { %2045 = vmatprep.subr.mxu1 %v3070_v9 }
 0x308   :  { %2046 = vmatpush3.msra.mxu1 %v3070_v9 }
 0x309   :  { %2047 = vmatprep.subr.mxu1 %v3071_v11 }
 0x30a   :  { %2048 = vmatpush3.msra.mxu1 %v3071_v11 }
 0x30b   :  { %2049 = vmatprep.subr.mxu1 %v3072_v12 }
 0x30c   :  { %2050 = vmatpush3.msra.mxu1 %v3072_v12 }
 0x30d   :  { %2051 = vmatprep.subr.mxu1 %v3073_v13 }
 0x30e   :  { %2052 = vmatpush3.msra.mxu1 %v3073_v13 }
 0x30f   :  { %2053 = vmatprep.subr.mxu1 %v3074_v14 }
 0x310   :  { %2054 = vmatpush3.msra.mxu1 %v3074_v14 }
 0x311   :  { %2055 = vmatprep.subr.mxu1 %v3075_v16 }
 0x312   :  { %2056 = vmatpush3.msra.mxu1 %v3075_v16 }
 0x313   :  { %2057 = vmatprep.subr.mxu1 %v3076_v17 }
 0x314   :  { %2058 = vmatpush3.msra.mxu1 %v3076_v17 }
 0x315   :  { %2059 = vmatprep.subr.mxu1 %v3077_v18 }
 0x316   :  { %2060 = vmatpush3.msra.mxu1 %v3077_v18 }
 0x317   :  { %2061 = vmatprep.subr.mxu1 %v3078_v20 }
 0x318   :  { %2062 = vmatpush3.msra.mxu1 %v3078_v20 }
 0x319   :  { %2063 = vmatprep.subr.mxu1 %v3079_v22 }
 0x31a   :  { %2064 = vmatpush3.msra.mxu1 %v3079_v22 }
 0x31b   :  { %2065 = vmatprep.subr.mxu1 %v3080_v24 }
 0x31c   :  { %2066 = vmatpush3.msra.mxu1 %v3080_v24 }
 0x31d   :  { %2067 = vmatprep.subr.mxu1 %v3081_v26 }
 0x31e   :  { %2068 = vmatpush3.msra.mxu1 %v3081_v26 }
 0x31f   :  { %2110 = vmatprep.subr.mxu1 %v3066_v2 }
 0x397   :  { %v1943_v28 = vpop.f32.mrf.mxu1 }
 0x399   :  { %v897_v30 = vpop.f32.mrf.mxu1 }
 0x39a   :  { %2031 = vmatprep.mubr.f32.mxu0 %v897_v30 }
 0x39b   :  { %v1946_v32 = vpop.f32.mrf.mxu1  ;;  %2032 = vmatmul.mubr.f32.vlgmr.msra.gmra.mxu0 %v1943_v28 }
 0x39c   :  { %2076 = vmatpush3.msra.mxu0 %v3082_v34 }
 0x39d   :  { %v907_v36 = vpop.f32.mrf.mxu1  ;;  %2077 = vmatprep.subr.mxu0 %v3066_v2 }
 0x39e   :  { %2034 = vmatprep.mubr.f32.mxu0 %v907_v36  ;;  %2078 = vmatpush3.msra.mxu0 %v3083_v38 }
 0x39f   :  { %v1957_v40 = vpop.f32.mrf.mxu1  ;;  %2035 = vmatmul.mubr.f32.gmra.mxu0 %v1946_v32  ;;  %2079 = vmatprep.subr.mxu0 %v3066_v2 }
 0x3a0   :  { %2080 = vmatpush3.msra.mxu0 %v3084_v41  ;;  %2107 = vmatprep.mubr.msk.f32.mxu0 %vm2299_vm1, %v3066_v2 }
 0x3a1   :  { %v982_v42 = vpop.f32.mrf.mxu1  ;;  %2081 = vmatprep.subr.mxu0 %v3066_v2 }
 0x3a2   :  { %2069 = vmatprep.mubr.f32.mxu1 %v982_v42  ;;  %2082 = vmatpush3.msra.mxu0 %v3085_v51 }
 0x3a3   :  { %v1960_v0 = vpop.f32.mrf.mxu1  ;;  %2070 = vmatmul.mubr.f32.vlgmr.msra.gmra.mxu1 %v1957_v40  ;;  %2083 = vmatprep.subr.mxu0 %v3066_v2 }
 0x3a4   :  { %2111 = vmatpush3.msra.mxu1 %v3082_v34  ;;  %2084 = vmatpush3.msra.mxu0 %v3086_v49 }
 0x3a5   :  { %v992_v46 = vpop.f32.mrf.mxu1  ;;  %2112 = vmatprep.subr.mxu1 %v3066_v2  ;;  %2085 = vmatprep.subr.mxu0 %v3066_v2 }
 0x3a6   :  { %2072 = vmatprep.mubr.f32.mxu1 %v992_v46  ;;  %2113 = vmatpush3.msra.mxu1 %v3083_v38 }
 0x3a7   :  { %2073 = vmatmul.mubr.f32.gmra.mxu1 %v1960_v0  ;;  %2114 = vmatprep.subr.mxu1 %v3066_v2 }
 0x3a8   :  { %2115 = vmatpush3.msra.mxu1 %v3084_v41  ;;  %2086 = vmatpush3.msra.mxu0 %v3087_v48 }
 0x3a9   :  { %2116 = vmatprep.subr.mxu1 %v3066_v2  ;;  %2087 = vmatprep.subr.mxu0 %v3066_v2 }
 0x3aa   :  { %2117 = vmatpush3.msra.mxu1 %v3085_v51  ;;  %2088 = vmatpush3.msra.mxu0 %v3088_v63 }
 0x3ab   :  { %2118 = vmatprep.subr.mxu1 %v3066_v2  ;;  %2089 = vmatprep.subr.mxu0 %v3066_v2 }
 0x3ac   :  { %2119 = vmatpush3.msra.mxu1 %v3086_v49  ;;  %2090 = vmatpush3.msra.mxu0 %v3089_v7 }
 0x3ad   :  { %2120 = vmatprep.subr.mxu1 %v3066_v2  ;;  %2091 = vmatprep.subr.mxu0 %v3066_v2 }
 0x3ae   :  { %2121 = vmatpush3.msra.mxu1 %v3087_v48  ;;  %2092 = vmatpush3.msra.mxu0 %v3090_v10  ;;  %v1260_v48 = vld [vmem:[%s2968_s7] sm:$0x1]  ;;  %s2300_s7 = smov [#allocation11]  }
 0x3af   :  { %2122 = vmatprep.subr.mxu1 %v3066_v2  ;;  %2093 = vmatprep.subr.mxu0 %v3066_v2  ;;  %s1471_s18 = sshll.u32 %s2300_s7, 4  ;;  %s1472_s18 = int_to_ptr.vmem [resolvable:$true] %s1471_s18 }
 0x3b0   :  { %2123 = vmatpush3.msra.mxu1 %v3088_v63  ;;  %2094 = vmatpush3.msra.mxu0 %v3091_v15  ;;  %p2268_p12 = scmp.lt.s32.totalorder %s1472_s18, %s1472_s18 }
 0x3b1   :  { %2124 = vmatprep.subr.mxu1 %v3066_v2  ;;  %2095 = vmatprep.subr.mxu0 %v3066_v2 }
 0x3b2   :  { %2125 = vmatpush3.msra.mxu1 %v3089_v7  ;;  %2096 = vmatpush3.msra.mxu0 %v3092_v19 }
 0x3b3   :  { %2126 = vmatprep.subr.mxu1 %v3066_v2  ;;  %2097 = vmatprep.subr.mxu0 %v3066_v2 }
 0x3b4   :  { %2127 = vmatpush3.msra.mxu1 %v3090_v10  ;;  %2098 = vmatpush3.msra.mxu0 %v3093_v21  ;;  %v1261_v10 = vld [vmem:[%s2969_s8] sm:$0x1]  ;;  %s2263_s8 = scalar_lea.vmem %s1472_s18, 512 }
 0x3b5   :  { %2128 = vmatprep.subr.mxu1 %v3066_v2  ;;  %2099 = vmatprep.subr.mxu0 %v3066_v2  ;;  %p2264_p11 = scmp.ne.s32.totalorder %s1472_s18, %s2263_s8  ;;  %p2269_p13 = scmp.lt.s32.totalorder %s2263_s8, %s2263_s8 }
 0x3b6   :  { %2129 = vmatpush3.msra.mxu1 %v3091_v15  ;;  %2100 = vmatpush3.msra.mxu0 %v3094_v23 }
 0x3b7   :  { %2130 = vmatprep.subr.mxu1 %v3066_v2  ;;  %2101 = vmatprep.subr.mxu0 %v3066_v2  ;;  %p2270_p0 = por %p2269_p13, %p2268_p12 }
 0x3b8   :  { %2131 = vmatpush3.msra.mxu1 %v3092_v19  ;;  %2102 = vmatpush3.msra.mxu0 %v3095_v25 }
 0x3b9   :  { %2132 = vmatprep.subr.mxu1 %v3066_v2  ;;  %2103 = vmatprep.subr.mxu0 %v3066_v2  ;;  %p2271_p1 = pnand %p2270_p0, %p2264_p11 }
 0x3ba   :  { %2133 = vmatpush3.msra.mxu1 %v3093_v21  ;;  %2104 = vmatpush3.msra.mxu0 %v3096_v27 }
 0x3bb   :  { %2134 = vmatprep.subr.mxu1 %v3066_v2  ;;  %2105 = vmatprep.subr.mxu0 %v3066_v2 }
 0x3bc   :  { %2135 = vmatpush3.msra.mxu1 %v3094_v23  ;;  %2106 = vmatpush3.msra.mxu0 %v3097_v29 }
 0x3bd   :  { %2136 = vmatprep.subr.mxu1 %v3066_v2  ;;  %2142 = vmatprep.mubr.msk.f32.mxu1 %vm2299_vm1, %v3066_v2 }
 0x3be   :  { %2137 = vmatpush3.msra.mxu1 %v3095_v25 }
 0x3bf   :  { %2138 = vmatprep.subr.mxu1 %v3066_v2  ;;  %v1995_v31 = vpop.f32.mrf.mxu1 }
 0x3c0   :  { %2139 = vmatpush3.msra.mxu1 %v3096_v27 }
 0x3c1   :  { %2140 = vmatprep.subr.mxu1 %v3066_v2  ;;  %v1067_v33 = vpop.f32.mrf.mxu1 }
 0x3c2   :  { %2141 = vmatpush3.msra.mxu1 %v3097_v29 }
 0x3c3   :  { %v1998_v37 = vpop.f32.mrf.mxu1 }
 0x3c5   :  { %v1077_v44 = vpop.f32.mrf.mxu1 }
 0x45b   :  { %v2033_v35 = vpop.f32.mrf.mxu0 }
 0x45c   :  { %v1158_v54 = vadd.f32 %v2033_v35, %v1995_v31 }
 0x45d   :  { %v1152_v43 = vpop.f32.mrf.mxu0 }
 0x45e   :  { %v1153_v57 = vadd.f32 %v1152_v43, %v1067_v33 }
 0x45f   :  { %v2036_v45 = vpop.f32.mrf.mxu0 }
 0x460   :  { %v1168_v62 = vadd.f32 %v2036_v45, %v1998_v37 }
 0x461   :  { %v1162_v53 = vpop.f32.mrf.mxu0 }
 0x462   :  { %v1163_v3 = vadd.f32 %v1162_v53, %v1077_v44  ;;  %v2159_v44 = vld [vmem:[#allocation2] sm:$0xff] }
 0x463   :  { %v2071_v52 = vpop.f32.mrf.mxu1 }
 0x464   :  { %v1257_v56 = vadd.f32 %v2071_v52, %v1158_v54  ;;  %v2160_v52 = vld [vmem:[#allocation2 + $0x8] sm:$0xff] }
 0x465   :  { %v1237_v55 = vpop.f32.mrf.mxu1 }
 0x466   :  { %v1256_v59 = vadd.f32 %v1237_v55, %v1153_v57  ;;  %v1272_v50 = vmul.f32 %v1257_v56, %v1257_v56  ;;  %v2161_v57 = vld [vmem:[#allocation2 + $0x10] sm:$0xff]  ;;  %v2162_v55 = vld [vmem:[#allocation2 + $0x18] sm:$0xff] }
 0x467   :  { %v2074_v60 = vpop.f32.mrf.mxu1 }
 0x468   :  { %v1271_v2 = vmul.f32 %v1256_v59, %v1256_v59  ;;  %v1262_v58 = vadd.f32 %v1257_v56, %v1256_v59  ;;  %v1259_v47 = vadd.f32 %v2074_v60, %v1168_v62 }
 0x469   :  { %v1247_v4 = vpop.f32.mrf.mxu1 }
 0x46a   :  { %v1258_v61 = vadd.f32 %v1247_v4, %v1163_v3  ;;  %v1275_v1 = vadd.f32 %v1272_v50, %v1271_v2  ;;  %v1274_v8 = vmul.f32 %v1259_v47, %v1259_v47 }
 0x46c   :  { %v1263_v5 = vadd.f32 %v1262_v58, %v1258_v61  ;;  %v1273_v6 = vmul.f32 %v1258_v61, %v1258_v61 }
 0x46e   :  { %v1264_v9 = vadd.f32 %v1263_v5, %v1259_v47  ;;  %v1276_v11 = vadd.f32 %v1275_v1, %v1273_v6 }
 0x470   :  { %v1265_v12 = vrot.slane %v1264_v9, 4  ;;  %v1277_v13 = vadd.f32 %v1276_v11, %v1274_v8 }
 0x472   :  { %v1266_v14 = vadd.f32 %v1265_v12, %v1264_v9  ;;  %v1278_v16 = vrot.slane %v1277_v13, 4 }
 0x474   :  { %v1267_v17 = vrot.slane %v1266_v14, 2  ;;  %v1279_v18 = vadd.f32 %v1278_v16, %v1277_v13 }
 0x476   :  { %v1268_v20 = vadd.f32 %v1267_v17, %v1266_v14  ;;  %v1280_v22 = vrot.slane %v1279_v18, 2 }
 0x478   :  { %v1269_v24 = vrot.slane %v1268_v20, 1  ;;  %v1281_v26 = vadd.f32 %v1280_v22, %v1279_v18 }
 0x47a   :  { %v1270_v28 = vadd.f32 %v1269_v24, %v1268_v20  ;;  %v1282_v30 = vrot.slane %v1281_v26, 1 }
 0x47c   :  { %2108 = vmatmul.mubr.f32.vlgmr.msra.gmra.mxu0 %v1270_v28  ;;  %v1283_v32 = vadd.f32 %v1282_v30, %v1281_v26 }
 0x47e   :  { %2143 = vmatmul.mubr.f32.vlgmr.msra.gmra.mxu1 %v1283_v32 }
 0x53c   :  { %v1350_v34 = vpop.f32.mrf.mxu0 }
 0x53d   :  { %v1354_v36 = vmul.f32 0.001953125, %v1350_v34 }
 0x53e   :  { %v2109_v38 = vpop.f32.mrf.mxu0  ;;  %v1421_v40 = vpop.f32.mrf.mxu1 }
 0x53f   :  { %v1426_v41 = vmul.f32 %v1354_v36, %v1354_v36  ;;  %v1425_v42 = vmul.f32 0.001953125, %v1421_v40 }
 0x540   :  { %v2144_v51 = vpop.f32.mrf.mxu1 }
 0x541   :  { %v1427_v0 = vsub.f32 %v1425_v42, %v1426_v41 }
 0x543   :  { %v1428_v49 = vmax.f32 %v1427_v0, 0.0 }
 0x545   :  { %v1429_v46 = vadd.f32 1e-05, %v1428_v49 }
 0x547   :  { %2157 = vrsqrt.f32 %v1429_v46 }
 0x554   :  { %v2158_v63 = vpop.eup %2157 }
 0x555   :  { %v1431_v7 = vmul.f32 %v2158_v63, %v1260_v48 }
 0x557   :  { %v1432_v15 = vmul.f32 %v1431_v7, %v1354_v36  ;;  %v1438_v19 = vrot.slane %v1431_v7, %v2784_v39 }
 0x559   :  { %v1433_v21 = vsub.f32 %v1261_v10, %v1432_v15  ;;  %v1440_v23 = vmul.f32 %v1438_v19, %v1256_v59  ;;  %v1441_v25 = vmul.f32 %v1438_v19, %v1257_v56  ;;  %v1442_v27 = vmul.f32 %v1438_v19, %v1258_v61 }
 0x55a   :  { %v1443_v29 = vmul.f32 %v1438_v19, %v1259_v47 }
 0x55b   :  { %v1448_v31 = vrot.slane %v1433_v21, %v2784_v39 }
 0x55d   :  { %v1450_v33 = vadd.f32 %v1448_v31, %v1440_v23  ;;  %v1451_v35 = vadd.f32 %v1448_v31, %v1441_v25  ;;  %v1452_v37 = vadd.f32 %v1448_v31, %v1442_v27  ;;  %v1453_v43 = vadd.f32 %v1448_v31, %v1443_v29 }
 0x55f   :  { %v1454_v45 = vadd.f32 %v2159_v44, %v1450_v33  ;;  %v1455_v54 = vadd.f32 %v2160_v52, %v1451_v35  ;;  %v1456_v53 = vadd.f32 %v2161_v57, %v1452_v37  ;;  %v1457_v60 = vadd.f32 %v2162_v55, %v1453_v43 }
 0x561   :  { %v1458_v59 = vmax.f32 %v1454_v45, 0.0  ;;  %v1459_v56 = vmax.f32 %v1455_v54, 0.0  ;;  %v1460_v62 = vmax.f32 %v1456_v53, 0.0  ;;  %v1461_v3 = vmax.f32 %v1457_v60, 0.0 }
 0x563   :  { %1462 = vst [vmem:[#allocation11] sm:$0xff] %v1458_v59  ;;  %1463 = vst [vmem:[#allocation11 + $0x8] sm:$0xff] %v1459_v56 }
 0x564   :  { %1464 = vst [vmem:[#allocation11 + $0x10] sm:$0xff] %v1460_v62  ;;  %1465 = vst [vmem:[#allocation11 + $0x18] sm:$0xff] %v1461_v3 }
 0x565   :  { %2274 = shalt.err (!%p2271_p1)
}
 0x566   :  { %1477 = dma.vmem_to_hbm [thread:$0]  %s1472_s18, 512, %s2970_s9, [#allocation4], %s2293_s14, %s2293_s14, %s2294_s15  }
 0x567   :  { %2289 = dma.done.wait [#allocation4], 512  }
 0x568   :  { %2290 = vsyncadd [#allocation4], 4294966784 }
 0x569   :  { %1481 = vsyncpa [#allocation3], 1 }
 0x56a   :  { %1482 = vsyncpa [#allocation6], 1 }
 0x56b   :  { %1483 = vsyncpa [#allocation9], 1 }
 0x56c   :  { %1484 = vsyncpa [#allocation4], 1 }

</bundles_post_ra>
